<compile_context>
chip_gen: v6e
topology: v6e:2x2x1
jax: 0.10.0
libtpu: 0.0.40
codegen_flags: <defaults>
</compile_context>

<pallas_src>
import math

import jax
import jax.numpy as jnp
from jax.experimental import pallas as pl
from jax.experimental.pallas import tpu as pltpu


# ------------------------------------------------------------ tile sizing ----
def _vmem_bytes():
    try:
        return int(pltpu.get_tpu_info().vmem_capacity_bytes)
    except Exception:
        return 64 * 1024 * 1024  # v7x per-core VMEM; conservative everywhere


def _pick_s_tile(S, H, itemsize):
    """Largest S-tile (multiple of 8 that divides S) whose x block stays well
    under the per-generation VMEM budget (double-buffered pipeline)."""
    budget = _vmem_bytes() // 16
    rows = max(8, budget // max(1, H * itemsize))
    if rows >= S:
        return S
    rows = (rows // 8) * 8
    for t in range(rows, 7, -8):
        if S % t == 0:
            return t
    return S  # fallback: untiled (still correct)


_DIMSEM = pltpu.CompilerParams(dimension_semantics=("parallel", "arbitrary"))


# ---------------------------------------------------------------- kernels ----
def _simple_pool_kernel(len_ref, x_ref, cls_ref, max_ref, mean_ref,
                        max_sc, sum_sc):
    b, s = pl.program_id(0), pl.program_id(1)
    x = x_ref[0].astype(jnp.float32)                    # (T, H) current tile
    T = x.shape[0]

    @pl.when(s == 0)                                    # per-batch-row init
    def _():
        cls_ref[0] = x[0:1, :].astype(cls_ref.dtype)    # CLS token lives in tile 0
        max_sc[...] = jnp.full(max_sc.shape, -jnp.inf, max_sc.dtype)
        sum_sc[...] = jnp.zeros(sum_sc.shape, sum_sc.dtype)

    length = len_ref[b]                                 # scalar from SMEM
    row = jax.lax.broadcasted_iota(jnp.int32, (T, 1), 0) + s * T
    valid = (row < length).astype(jnp.float32)          # (T, 1) prefix mask
    max_sc[...] = jnp.maximum(max_sc[...], jnp.max(x, axis=0, keepdims=True))
    sum_sc[...] = sum_sc[...] + jnp.sum(x * valid, axis=0, keepdims=True)

    @pl.when(s == pl.num_programs(1) - 1)               # finalize
    def _():
        max_ref[0] = max_sc[...].astype(max_ref.dtype)
        denom = (jnp.maximum(length.astype(jnp.float32), 1e-9)
                 * jnp.ones((1, 1), jnp.float32))       # torch.clamp(min=1e-9)
        mean_ref[0] = (sum_sc[...] * pl.reciprocal(denom, approx=True)
                       ).astype(mean_ref.dtype)


def _attention_pool_kernel(len_ref, x_ref, w1_ref, vec_ref, out_ref,
                           m_sc, l_sc, acc_sc):
    b, s = pl.program_id(0), pl.program_id(1)
    x = x_ref[0].astype(jnp.float32)                    # (T, H)
    T = x.shape[0]

    @pl.when(s == 0)
    def _():
        m_sc[...] = jnp.full(m_sc.shape, -jnp.inf, m_sc.dtype)
        l_sc[...] = jnp.zeros(l_sc.shape, l_sc.dtype)
        acc_sc[...] = jnp.zeros(acc_sc.shape, acc_sc.dtype)

    w1 = w1_ref[...]                                    # (H, A_pad) pre-transposed
    b1 = vec_ref[0:1, :]                                # (1, A_pad)
    w2 = vec_ref[1:2, :]                                # (1, A_pad)
    h = jnp.tanh(jnp.dot(x, w1, preferred_element_type=jnp.float32) + b1)
    # final Linear(A, 1): bias is constant over S and cancels in softmax.
    scores = jnp.sum(h * w2, axis=-1, keepdims=True)    # (T, 1)
    length = len_ref[b]
    row = jax.lax.broadcasted_iota(jnp.int32, (T, 1), 0) + s * T
    scores = scores + jnp.where(row < length, 0.0, -1e9)

    # online softmax over the seq (grid) axis -> x streamed exactly once
    m_new = jnp.maximum(m_sc[...], jnp.max(scores, axis=0, keepdims=True))
    alpha = jnp.exp(m_sc[...] - m_new)
    p = jnp.exp(scores - m_new)                         # (T, 1)
    l_sc[...] = alpha * l_sc[...] + jnp.sum(p, axis=0, keepdims=True)
    acc_sc[...] = alpha * acc_sc[...] + jnp.sum(p * x, axis=0, keepdims=True)
    m_sc[...] = m_new

    @pl.when(s == pl.num_programs(1) - 1)
    def _():
        inv_l = pl.reciprocal(l_sc[...], approx=True)
        out_ref[0] = (acc_sc[...] * inv_l).astype(out_ref.dtype)


def _cnn_pool_kernel(x_ref, w_ref, b_ref, out_ref, xprev_sc, pend_sc, max_sc):
    # Conv1d(k=3, pad=1): out[s] = b + W0 x[s-1] + W1 x[s] + W2 x[s+1]
    s = pl.program_id(1)
    x = x_ref[0].astype(jnp.float32)                    # (T, H) current tile
    T, H = x.shape
    bias = b_ref[...]                                   # (1, H)

    @pl.when(s == 0)
    def _():
        xprev_sc[...] = jnp.zeros(xprev_sc.shape, xprev_sc.dtype)  # zero pad x[-1]
        max_sc[...] = jnp.full(max_sc.shape, -jnp.inf, max_sc.dtype)

    w = w_ref[...]                                      # (3H, H) = [W0^T; W1^T; W2^T]
    c0 = jnp.dot(x, w[0:H, :], preferred_element_type=jnp.float32)
    c1 = jnp.dot(x, w[H:2 * H, :], preferred_element_type=jnp.float32)
    c2 = jnp.dot(x, w[2 * H:3 * H, :], preferred_element_type=jnp.float32)
    prev0 = jnp.dot(xprev_sc[...], w[0:H, :],
                    preferred_element_type=jnp.float32)  # W0 * (prev tile last row)

    # complete the carried output row of the previous tile (needed W2 x[row 0])
    @pl.when(s > 0)
    def _():
        done = jnp.maximum(pend_sc[...] + c2[0:1, :], 0.0)
        max_sc[...] = jnp.maximum(max_sc[...], done)

    # output rows 0 .. T-2 of this tile are fully determined by {prev row, tile}
    w0_part = jnp.concatenate([prev0, c0[0:T - 2, :]], axis=0)     # (T-1, H)
    y = bias + w0_part + c1[0:T - 1, :] + c2[1:T, :]
    y = jnp.maximum(y, 0.0)                                        # ReLU
    max_sc[...] = jnp.maximum(max_sc[...], jnp.max(y, axis=0, keepdims=True))

    # carry the (incomplete) last output row and the last input row forward
    pend_sc[...] = bias + c0[T - 2:T - 1, :] + c1[T - 1:T, :]
    xprev_sc[...] = x[T - 1:T, :]

    @pl.when(s == pl.num_programs(1) - 1)
    def _():
        done = jnp.maximum(pend_sc[...], 0.0)           # missing W2 term is zero pad
        out_ref[0] = jnp.maximum(max_sc[...], done).astype(out_ref.dtype)


# --------------------------------------------------------------- wrappers ----
def simple_pool(last_hidden_state, lengths, *, s_tile=None):
    """Returns (cls, max, mean) pooled embeddings, each (B, H)."""
    B, S, H = last_hidden_state.shape
    T = s_tile or _pick_s_tile(S, H, last_hidden_state.dtype.itemsize)
    assert S % T == 0
    out = jax.ShapeDtypeStruct((B, 1, H), jnp.float32)
    grid_spec = pltpu.PrefetchScalarGridSpec(
        num_scalar_prefetch=1,
        grid=(B, S // T),
        in_specs=[pl.BlockSpec((1, T, H), lambda b, s, lens: (b, s, 0))],
        out_specs=(pl.BlockSpec((1, 1, H), lambda b, s, lens: (b, 0, 0)),) * 3,
        scratch_shapes=[pltpu.VMEM((1, H), jnp.float32),
                        pltpu.VMEM((1, H), jnp.float32)],
    )
    cls_o, max_o, mean_o = pl.pallas_call(
        _simple_pool_kernel,
        out_shape=(out, out, out),
        grid_spec=grid_spec,
        compiler_params=_DIMSEM,
    )(lengths, last_hidden_state)
    return cls_o[:, 0, :], max_o[:, 0, :], mean_o[:, 0, :]


def attention_pool(last_hidden_state, lengths, w1, b1, w2, *, s_tile=None):
    """w1: (A, H), b1: (A,), w2: (1, A) (PyTorch layout); final bias b2 cancels
    in the softmax and is omitted (exactly)."""
    B, S, H = last_hidden_state.shape
    A = w1.shape[0]
    A_pad = ((A + 127) // 128) * 128                    # lane-pad attn dim for MXU
    w1_t = jnp.zeros((H, A_pad), jnp.float32).at[:, :A].set(jnp.transpose(w1))
    vec = (jnp.zeros((2, A_pad), jnp.float32)
           .at[0, :A].set(b1).at[1, :A].set(w2[0]))     # packed [b1; w2]
    T = s_tile or _pick_s_tile(S, H, last_hidden_state.dtype.itemsize)
    assert S % T == 0
    grid_spec = pltpu.PrefetchScalarGridSpec(
        num_scalar_prefetch=1,
        grid=(B, S // T),
        in_specs=[pl.BlockSpec((1, T, H), lambda b, s, lens: (b, s, 0)),
                  pl.BlockSpec((H, A_pad), lambda b, s, lens: (0, 0)),
                  pl.BlockSpec((2, A_pad), lambda b, s, lens: (0, 0))],
        out_specs=pl.BlockSpec((1, 1, H), lambda b, s, lens: (b, 0, 0)),
        scratch_shapes=[pltpu.VMEM((1, 1), jnp.float32),
                        pltpu.VMEM((1, 1), jnp.float32),
                        pltpu.VMEM((1, H), jnp.float32)],
    )
    out = pl.pallas_call(
        _attention_pool_kernel,
        out_shape=jax.ShapeDtypeStruct((B, 1, H), jnp.float32),
        grid_spec=grid_spec,
        compiler_params=_DIMSEM,
    )(lengths, last_hidden_state, w1_t, vec)
    return out[:, 0, :]


def cnn_pool(last_hidden_state, conv_w, conv_b, *, s_tile=None):
    """conv_w: (H, H, K) PyTorch Conv1d weight (out, in, k), conv_b: (H,)."""
    B, S, H = last_hidden_state.shape
    K = conv_w.shape[-1]
    assert K == 3, "implements the module default cnn_kernel_size=3"
    # TODO(synk): generalize the one-row halo carry to K > 3 (pad = K // 2 rows).
    slab = jnp.concatenate(
        [jnp.transpose(conv_w[:, :, k]).astype(jnp.float32) for k in range(K)],
        axis=0)                                          # (3H, H) packed taps
    bias = conv_b.astype(jnp.float32)[None, :]           # (1, H)
    T = s_tile or _pick_s_tile(S, H, last_hidden_state.dtype.itemsize)
    assert S % T == 0 and T >= 3
    grid_spec = pltpu.PrefetchScalarGridSpec(
        num_scalar_prefetch=0,
        grid=(B, S // T),
        in_specs=[pl.BlockSpec((1, T, H), lambda b, s: (b, s, 0)),
                  pl.BlockSpec((3 * H, H), lambda b, s: (0, 0)),
                  pl.BlockSpec((1, H), lambda b, s: (0, 0))],
        out_specs=pl.BlockSpec((1, 1, H), lambda b, s: (b, 0, 0)),
        scratch_shapes=[pltpu.VMEM((1, H), jnp.float32),   # prev-tile last row
                        pltpu.VMEM((1, H), jnp.float32),   # pending output row
                        pltpu.VMEM((1, H), jnp.float32)],  # running ReLU-max
    )
    out = pl.pallas_call(
        _cnn_pool_kernel,
        out_shape=jax.ShapeDtypeStruct((B, 1, H), jnp.float32),
        grid_spec=grid_spec,
        compiler_params=_DIMSEM,
    )(last_hidden_state, slab, bias)
    return out[:, 0, :]


# ------------------------------------------------------------- references ----
def _refs(x, mask, w1, b1, w2, b2, conv_w, conv_b):
    m3 = mask[:, :, None]
    cls_r = x[:, 0, :]
    max_r = jnp.max(x, axis=1)
    mean_r = jnp.sum(x * m3, axis=1) / jnp.maximum(jnp.sum(m3, axis=1), 1e-9)
    h = jnp.tanh(x @ w1.T + b1)
    scores = (h @ w2.T)[..., 0] + b2[0]                  # reference keeps b2
    scores = scores + (1.0 - mask) * -1e9
    wts = jax.nn.softmax(scores, axis=1)
    att_r = jnp.sum(x * wts[:, :, None], axis=1)
    pad = conv_w.shape[-1] // 2
    y = jax.lax.conv_general_dilated(
        jnp.transpose(x, (0, 2, 1)), conv_w, (1,), [(pad, pad)],
        dimension_numbers=("NCH", "OIH", "NCH")) + conv_b[None, :, None]
    cnn_r = jnp.max(jnp.maximum(y, 0.0), axis=-1)
    return cls_r, max_r, mean_r, att_r, cnn_r


if __name__ == "__main__":
    B, S, H, A, K = 2, 16, 32, 64, 3
    S_TILE = 8   # forces 2 sequence tiles -> exercises the pipelined reduction,
                 # online softmax, and conv halo-carry paths
    key = jax.random.PRNGKey(0)
    ks = jax.random.split(key, 7)

    # TODO(synk): the pretrained AutoModel backbone is not re-implemented; its
    # last_hidden_state is modeled here as a random [B, S, H] input tensor.
    x = jax.random.normal(ks[0], (B, S, H), jnp.float32)
    lengths = jnp.array([S, 11], dtype=jnp.int32)
    attention_mask = (jnp.arange(S)[None, :] < lengths[:, None]).astype(jnp.float32)

    s1, s2, sc = 1.0 / math.sqrt(H), 1.0 / math.sqrt(A), 1.0 / math.sqrt(H * K)
    w1 = jax.random.uniform(ks[1], (A, H), jnp.float32, -s1, s1)
    b1 = jax.random.uniform(ks[2], (A,), jnp.float32, -s1, s1)
    w2 = jax.random.uniform(ks[3], (1, A), jnp.float32, -s2, s2)
    b2 = jax.random.uniform(ks[4], (1,), jnp.float32, -s2, s2)
    conv_w = jax.random.uniform(ks[5], (H, H, K), jnp.float32, -sc, sc)
    conv_b = jax.random.uniform(ks[6], (H,), jnp.float32, -sc, sc)

    cls_o, max_o, mean_o = simple_pool(x, lengths, s_tile=S_TILE)
    att_o = attention_pool(x, lengths, w1, b1, w2, s_tile=S_TILE)
    cnn_o = cnn_pool(x, conv_w, conv_b, s_tile=S_TILE)
    jax.block_until_ready((cls_o, max_o, mean_o, att_o, cnn_o))

    cls_r, max_r, mean_r, att_r, cnn_r = _refs(
        x, attention_mask, w1, b1, w2, b2, conv_w, conv_b)

    for name, got, want in [("cls", cls_o, cls_r), ("max", max_o, max_r),
                            ("mean", mean_o, mean_r), ("attention", att_o, att_r),
                            ("cnn", cnn_o, cnn_r)]:
        assert got.shape == (B, H), (name, got.shape)
        err = float(jnp.max(jnp.abs(got - want)))
        assert jnp.allclose(got, want, atol=1e-3, rtol=1e-3), (
            f"{name} pooling mismatch: max abs err {err}")
    print("KERNEL_OK")
</pallas_src>

<mosaic_0001>
module attributes {stable_mosaic.version = 11 : i64} {
  func.func @_simple_pool_kernel(%arg0: i32, %arg1: i32, %arg2: memref<2xi32, #tpu.memory_space<smem>>, %arg3: memref<1x8x32xf32, #tpu.memory_space<vmem>>, %arg4: memref<1x1x32xf32, #tpu.memory_space<vmem>>, %arg5: memref<1x1x32xf32, #tpu.memory_space<vmem>>, %arg6: memref<1x1x32xf32, #tpu.memory_space<vmem>>, %arg7: memref<1x32xf32, #tpu.memory_space<vmem>>, %arg8: memref<1x32xf32, #tpu.memory_space<vmem>>) attributes {dimension_semantics = [#tpu.dimension_semantics<parallel>, #tpu.dimension_semantics<arbitrary>], iteration_bounds = array<i64: 2, 2>, scalar_prefetch = 1 : i64, scratch_operands = 2 : i64, tpu.core_type = #tpu.core_type<tc>, window_params = [{transform_indices = @transform_0, window_bounds = array<i64: 1, 8, 32>}, {transform_indices = @transform_1, window_bounds = array<i64: 1, 1, 32>}, {transform_indices = @transform_2, window_bounds = array<i64: 1, 1, 32>}, {transform_indices = @transform_3, window_bounds = array<i64: 1, 1, 32>}]} {
    %c0 = arith.constant 0 : index
    %c0_0 = arith.constant 0 : index
    %c0_1 = arith.constant 0 : index
    %0 = vector.load %arg3[%c0, %c0_0, %c0_1] : memref<1x8x32xf32, #tpu.memory_space<vmem>>, vector<1x8x32xf32>
    %1 = vector.shape_cast %0 : vector<1x8x32xf32> to vector<8x32xf32>
    %c0_i32 = arith.constant 0 : i32
    %2 = arith.cmpi eq, %arg1, %c0_i32 : i32
    %3 = arith.extui %2 : i1 to i32
    %c0_i32_2 = arith.constant 0 : i32
    %4 = arith.cmpi ne, %3, %c0_i32_2 : i32
    scf.if %4 {
      %30 = vector.extract_strided_slice %1 {offsets = [0, 0], sizes = [1, 32], strides = [1, 1]} : vector<8x32xf32> to vector<1x32xf32>
      %c0_13 = arith.constant 0 : index
      %c0_14 = arith.constant 0 : index
      %c0_15 = arith.constant 0 : index
      %31 = vector.load %arg4[%c0_13, %c0_14, %c0_15] : memref<1x1x32xf32, #tpu.memory_space<vmem>>, vector<1x1x32xf32>
      %32 = vector.shape_cast %31 : vector<1x1x32xf32> to vector<1x32xf32>
      %33 = vector.shape_cast %30 : vector<1x32xf32> to vector<1x1x32xf32>
      tpu.vector_store %arg4[%c0_13, %c0_14, %c0_15], %33 {strides = array<i32>} : memref<1x1x32xf32, #tpu.memory_space<vmem>>, vector<1x1x32xf32>,
      %cst_16 = arith.constant 0xFF800000 : f32
      %34 = vector.broadcast %cst_16 : f32 to vector<1x32xf32>
      %c0_17 = arith.constant 0 : index
      %c0_18 = arith.constant 0 : index
      %35 = vector.load %arg7[%c0_17, %c0_18] : memref<1x32xf32, #tpu.memory_space<vmem>>, vector<1x32xf32>
      tpu.vector_store %arg7[%c0_17, %c0_18], %34 {strides = array<i32>} : memref<1x32xf32, #tpu.memory_space<vmem>>, vector<1x32xf32>,
      %cst_19 = arith.constant 0.000000e+00 : f32
      %36 = vector.broadcast %cst_19 : f32 to vector<1x32xf32>
      %c0_20 = arith.constant 0 : index
      %c0_21 = arith.constant 0 : index
      %37 = vector.load %arg8[%c0_20, %c0_21] : memref<1x32xf32, #tpu.memory_space<vmem>>, vector<1x32xf32>
      tpu.vector_store %arg8[%c0_20, %c0_21], %36 {strides = array<i32>} : memref<1x32xf32, #tpu.memory_space<vmem>>, vector<1x32xf32>,
    } else {
    }
    %5 = arith.index_cast %arg0 : i32 to index
    %6 = memref.load %arg2[%5] : memref<2xi32, #tpu.memory_space<smem>>
    %7 = tpu.iota {dimensions = array<i32: 0>} : vector<8x1xi32>
    %c8_i32 = arith.constant 8 : i32
    %8 = arith.muli %arg1, %c8_i32 : i32
    %9 = vector.broadcast %8 : i32 to vector<8x1xi32>
    %10 = arith.addi %7, %9 : vector<8x1xi32>
    %11 = vector.broadcast %6 : i32 to vector<8x1xi32>
    %12 = arith.cmpi slt, %10, %11 : vector<8x1xi32>
    %13 = arith.extui %12 : vector<8x1xi1> to vector<8x1xi32>
    %14 = arith.sitofp %13 : vector<8x1xi32> to vector<8x1xf32>
    %c0_3 = arith.constant 0 : index
    %c0_4 = arith.constant 0 : index
    %15 = vector.load %arg7[%c0_3, %c0_4] : memref<1x32xf32, #tpu.memory_space<vmem>>, vector<1x32xf32>
    %cst = arith.constant dense<0xFF800000> : vector<32xf32>
    %16 = vector.multi_reduction <maximumf>, %1, %cst [0] : vector<8x32xf32> to vector<32xf32>
    %17 = vector.shape_cast %16 : vector<32xf32> to vector<1x32xf32>
    %18 = arith.maximumf %15, %17 : vector<1x32xf32>
    %c0_5 = arith.constant 0 : index
    %c0_6 = arith.constant 0 : index
    %19 = vector.load %arg7[%c0_5, %c0_6] : memref<1x32xf32, #tpu.memory_space<vmem>>, vector<1x32xf32>
    tpu.vector_store %arg7[%c0_5, %c0_6], %18 {strides = array<i32>} : memref<1x32xf32, #tpu.memory_space<vmem>>, vector<1x32xf32>,
    %c0_7 = arith.constant 0 : index
    %c0_8 = arith.constant 0 : index
    %20 = vector.load %arg8[%c0_7, %c0_8] : memref<1x32xf32, #tpu.memory_space<vmem>>, vector<1x32xf32>
    %21 = vector.broadcast %14 : vector<8x1xf32> to vector<8x32xf32>
    %22 = arith.mulf %1, %21 : vector<8x32xf32>
    %cst_9 = arith.constant dense<0.000000e+00> : vector<32xf32>
    %23 = vector.multi_reduction <add>, %22, %cst_9 [0] : vector<8x32xf32> to vector<32xf32>
    %24 = vector.shape_cast %23 : vector<32xf32> to vector<1x32xf32>
    %25 = arith.addf %20, %24 : vector<1x32xf32>
    %c0_10 = arith.constant 0 : index
    %c0_11 = arith.constant 0 : index
    %26 = vector.load %arg8[%c0_10, %c0_11] : memref<1x32xf32, #tpu.memory_space<vmem>>, vector<1x32xf32>
    tpu.vector_store %arg8[%c0_10, %c0_11], %25 {strides = array<i32>} : memref<1x32xf32, #tpu.memory_space<vmem>>, vector<1x32xf32>,
    %c1_i32 = arith.constant 1 : i32
    %27 = arith.cmpi eq, %arg1, %c1_i32 : i32
    %28 = arith.extui %27 : i1 to i32
    %c0_i32_12 = arith.constant 0 : i32
    %29 = arith.cmpi ne, %28, %c0_i32_12 : i32
    scf.if %29 {
      %c0_13 = arith.constant 0 : index
      %c0_14 = arith.constant 0 : index
      %30 = vector.load %arg7[%c0_13, %c0_14] : memref<1x32xf32, #tpu.memory_space<vmem>>, vector<1x32xf32>
      %c0_15 = arith.constant 0 : index
      %c0_16 = arith.constant 0 : index
      %c0_17 = arith.constant 0 : index
      %31 = vector.load %arg5[%c0_15, %c0_16, %c0_17] : memref<1x1x32xf32, #tpu.memory_space<vmem>>, vector<1x1x32xf32>
      %32 = vector.shape_cast %31 : vector<1x1x32xf32> to vector<1x32xf32>
      %33 = vector.shape_cast %30 : vector<1x32xf32> to vector<1x1x32xf32>
      tpu.vector_store %arg5[%c0_15, %c0_16, %c0_17], %33 {strides = array<i32>} : memref<1x1x32xf32, #tpu.memory_space<vmem>>, vector<1x1x32xf32>,
      %34 = arith.sitofp %6 : i32 to f32
      %cst_18 = arith.constant 9.99999971E-10 : f32
      %35 = arith.maximumf %34, %cst_18 : f32
      %cst_19 = arith.constant 1.000000e+00 : f32
      %36 = vector.broadcast %cst_19 : f32 to vector<1x1xf32>
      %37 = vector.broadcast %35 : f32 to vector<1x1xf32>
      %38 = arith.mulf %37, %36 : vector<1x1xf32>
      %c0_20 = arith.constant 0 : index
      %c0_21 = arith.constant 0 : index
      %39 = vector.load %arg8[%c0_20, %c0_21] : memref<1x32xf32, #tpu.memory_space<vmem>>, vector<1x32xf32>
      %40 = tpu.reciprocal %38 {approx = true} : vector<1x1xf32> -> vector<1x1xf32>
      %41 = vector.broadcast %40 : vector<1x1xf32> to vector<1x32xf32>
      %42 = arith.mulf %39, %41 : vector<1x32xf32>
      %c0_22 = arith.constant 0 : index
      %c0_23 = arith.constant 0 : index
      %c0_24 = arith.constant 0 : index
      %43 = vector.load %arg6[%c0_22, %c0_23, %c0_24] : memref<1x1x32xf32, #tpu.memory_space<vmem>>, vector<1x1x32xf32>
      %44 = vector.shape_cast %43 : vector<1x1x32xf32> to vector<1x32xf32>
      %45 = vector.shape_cast %42 : vector<1x32xf32> to vector<1x1x32xf32>
      tpu.vector_store %arg6[%c0_22, %c0_23, %c0_24], %45 {strides = array<i32>} : memref<1x1x32xf32, #tpu.memory_space<vmem>>, vector<1x1x32xf32>,
    } else {
    }
    return
  }
  func.func @transform_0(%arg0: i32, %arg1: i32, %arg2: memref<2xi32, #tpu.memory_space<smem>>) -> (i32, i32, i32) {
    %c0_i32 = arith.constant 0 : i32
    %c0_i32_0 = arith.constant 0 : i32
    return %arg0, %arg1, %c0_i32 : i32, i32, i32
  }
  func.func @transform_1(%arg0: i32, %arg1: i32, %arg2: memref<2xi32, #tpu.memory_space<smem>>) -> (i32, i32, i32) {
    %c0_i32 = arith.constant 0 : i32
    %c0_i32_0 = arith.constant 0 : i32
    %c0_i32_1 = arith.constant 0 : i32
    return %arg0, %c0_i32, %c0_i32_0 : i32, i32, i32
  }
  func.func @transform_2(%arg0: i32, %arg1: i32, %arg2: memref<2xi32, #tpu.memory_space<smem>>) -> (i32, i32, i32) {
    %c0_i32 = arith.constant 0 : i32
    %c0_i32_0 = arith.constant 0 : i32
    %c0_i32_1 = arith.constant 0 : i32
    return %arg0, %c0_i32, %c0_i32_0 : i32, i32, i32
  }
  func.func @transform_3(%arg0: i32, %arg1: i32, %arg2: memref<2xi32, #tpu.memory_space<smem>>) -> (i32, i32, i32) {
    %c0_i32 = arith.constant 0 : i32
    %c0_i32_0 = arith.constant 0 : i32
    %c0_i32_1 = arith.constant 0 : i32
    return %arg0, %c0_i32, %c0_i32_0 : i32, i32, i32
  }
}

</mosaic_0001>

<bundles_post_ra>
// kernel: tpu_custom_call.1
= control target key start
LH: loop header
LB: loop body
LE: loop exit
PB: predicated region body
PF: predicated region fallthrough
CT: control target
= control target key end

     0   :  { %s809_s15 = smov [#allocation5]   ;;  %s1124_s0 = inlined_call_operand.hbm [shape: s32[2], index: 0, kind: input, shape index: {}]   ;;  %s1125_s1 = inlined_call_operand.hbm [shape: f32[2,16,32], index: 1, kind: input, shape index: {}]   ;;  %s1126_s2 = inlined_call_operand.hbm [shape: f32[2,1,32], index: 2, kind: output, shape index: {0}]   ;;  %s1127_s3 = inlined_call_operand.hbm [shape: f32[2,1,32], index: 3, kind: output, shape index: {1}]   ;;  %s1128_s4 = inlined_call_operand.hbm [shape: f32[2,1,32], index: 4, kind: output, shape index: {2}]  }
   0x1   :  { %11 = dma.hbm_to_smem %s1124_s0, 16, %s809_s15, [#allocation4] }
   0x2   :  { %751 = dma.done.wait [#allocation4], 16 }
   0x3   :  { %752 = vsyncadd [#allocation4], 4294967280 }
   0x4   :  { %13 = sfence }
   0x5   :  { %14 = vsyncpa [#allocation7], 0 }
   0x6   :  { %16 = vsyncpa [#allocation7 + $0x1], 0 }
   0x7   :  { %17 = vsyncpa [#allocation8], 0 }
   0x8   :  { %19 = vsyncpa [#allocation8 + $0x1], 0 }
   0x9   :  { %20 = vsyncpa [#allocation11], 0 }
   0xa   :  { %22 = vsyncpa [#allocation11 + $0x1], 0  ;;  %s846_s18 = smov 0   ;;  %s848_s19 = smov 0  }
   0xb   :  { %s850_s20 = smov 0   ;;  %s852_s21 = smov 0  }
   0xc   :  { %s854_s22 = smov 0   ;;  %s856_s0 = smov 0  }
   0xd   :  { %s858_s23 = smov 0   ;;  %s860_s24 = smov 0  }
   0xe   :  { %s862_s25 = smov 0   ;;  %s864_s26 = smov 0  }
   0xf   :  { %s866_s27 = smov 0  }
  0x10 LB: > { %1133 = sst [smem:[#allocation17_spill]] %s787_s0  ;;  %s900_s28 = sadd.s32 4294967295, %s807_s27   ;;  %s807_s27 = sphi %s866_s27, %s28_s27   ;;  %s803_s26 = sphi %s864_s26, %s1156_s26   ;;  %s799_s25 = sphi %s862_s25, %s1155_s25   ;;  %s795_s24 = sphi %s860_s24, %s1154_s24   ;;  %s791_s23 = sphi %s858_s23, %s1153_s23   ;;  %s787_s0 = sphi %s856_s0, %s1145_s0   ;;  %s783_s22 = sphi %s854_s22, %s1152_s22   ;;  %s779_s21 = sphi %s852_s21, %s1151_s21   ;;  %s775_s20 = sphi %s850_s20, %s1150_s20   ;;  %s771_s19 = sphi %s848_s19, %s1149_s19   ;;  %s767_s18 = sphi %s846_s18, %s1148_s18  }
  0x11   : > { %s1131_s29 = sadd.s32 4294967294, %s807_s27   ;;  %s37_s30 = sadd.s32 1, %s799_s25 }
  0x12   : > { %s40_s5 = sadd.s32 1, %s803_s26  ;;  %p38_p0 = scmp.ge.s32.totalorder %s37_s30, 2 }
  0x13   : > { %s49_s6 = sadd.s32 1, %s787_s0  ;;  %p56_p1 = scmp.ne.s32.totalorder %s787_s0, %s783_s22 }
  0x14   : > { %p57_p2 = scmp.eq.s32.totalorder %s807_s27, 0  ;;  %s1158_s30 = smov (%p38_p0, %s37_s30), 0 }
  0x15   : > { %1134 = sst [smem:[#allocation18_spill]] %s1158_s30  ;;  %s1160_s5 = smov (!%p38_p0, %s40_s5), %s803_s26 }
  0x16   : > { %s45_s7 = ssub.s32 %s799_s25, %s1158_s30  ;;  %p914_p3 = por %p57_p2, %p56_p1 }
  0x17   : > { %p42_p4 = scmp.ge.s32.totalorder %s1160_s5, 2  ;;  %p62_p5 = scmp.ne.s32.totalorder %s783_s22, %s779_s21 }
  0x18   : > { %p63_p6 = scmp.eq.s32.totalorder %s900_s28, 0  ;;  %s75_s9 = sadd.s32 1, %s775_s20 }
  0x19   : > { %s1162_s5 = smov (%p42_p4, %s1160_s5), 0  ;;  %p85_p8 = scmp.ne.s32.totalorder %s775_s20, %s771_s19 }
  0x1a   : > { %1136 = sst [smem:[#allocation19_spill]] %s1162_s5  ;;  %p923_p7 = por %p63_p6, %p62_p5 }
  0x1b   : > { %s44_s11 = ssub.s32 %s803_s26, %s1162_s5  ;;  %p86_p9 = scmp.eq.s32.totalorder %s900_s28, 3 }
  0x1c   : > { %s46_s12 = sor.u32 %s45_s7, %s44_s11  ;;  %p73_p10 = scmp.eq.s32.totalorder %s44_s11, 0 }
  0x1d   : > { %p47_p11 = scmp.eq.s32.totalorder %s46_s12, 0  ;;  %p932_p12 = por %p86_p9, %p85_p8 }
  0x1e   : > { %s937_s14 = scalar_select %p73_p10, %s775_s20, %s75_s9  }
  0x1f   : > { %s940_s15 = scalar_select %p47_p11, %s787_s0, %s49_s6  }
  0x20   : > { %p91_p13 = scmp.ne.s32.totalorder %s771_s19, %s767_s18  ;;  %p92_p0 = scmp.eq.s32.totalorder %s1131_s29, 3 }
  0x21   : > { %1139 = sst [smem:[#allocation20_spill]] %s940_s15  ;;  %p496_p1 = scmp.lt.s32.totalorder %s807_s27, 4 }
  0x22   : > { %p947_p2 = por %p92_p0, %p91_p13  ;;  %s164_s17 = sand.u32 1, %s787_s0  }
  0x23   : > { %s460_s21 = sshll.u32 %s164_s17, 3  ;;  %s461_s7 = sshll.u32 %s803_s26, 1 }
  0x24   : > { %s1140_s16 = scalar_select %p947_p2, 1, 0 }
  0x25   : > { %s173_s11 = sadd.s32 %s799_s25, %s461_s7  ;;  %s168_s12 = scalar_lea.vmem [#allocation6], %s460_s21 }
  0x26   : > { %s177_s5 = sshll.u32 %s168_s12, 4  ;;  %s462_s9 = sshll.u32 %s173_s11, 7  ;;  %s178_s5 = int_to_ptr.vmem [resolvable:$true] %s177_s5 }
  0x27   : > { %s175_s15 = scalar_lea.hbm %s1125_s1, %s462_s9  ;;  %p959_p4 = pnand %p496_p1, %p914_p3 }
  0x28   : > { %p463_p5 = scmp.ge.s32.totalorder %s807_s27, 1  ;;  %p182_p6 = scmp.lt.s32.totalorder %s807_s27, 5 }
  0x29   : > { %s165_s0 = scalar_lea.sflag [#allocation7], %s164_s17  ;;  %p603_p8 = pneg %p959_p4 }
  0x2a   : > { %s614_s7 = scalar_lea.vmem %s178_s5, 128  ;;  %s810_s21 = smov [#allocation6]  }
  0x2b   : > { %p615_p9 = scmp.ne.s32.totalorder %s178_s5, %s614_s7  ;;  %s619_s11 = sshll.u32 %s810_s21, 4  ;;  %s620_s11 = int_to_ptr.vmem [resolvable:$false] %s619_s11 }
  0x2c   : > { %s621_s30 = scalar_lea.vmem %s620_s11, 256  ;;  %p622_p13 = scmp.lt.s32.totalorder %s178_s5, %s620_s11 }
  0x2d   : > { %p617_p10 = pnand %p615_p9, %p603_p8  ;;  %p623_p0 = scmp.lt.s32.totalorder %s621_s30, %s614_s7 }
  0x2f   : > { %p618_p11 = pneg %p617_p10  ;;  %p624_p3 = por %p623_p0, %p622_p13 }
  0x31   : > { %p625_p1 = pnand %p624_p3, %p618_p11 }
  0x33   : > { %628 = shalt.err (!%p625_p1)
}
  0x34   : > { %485 = dma.hbm_to_vmem [thread:$0]  (!%p959_p4), %s175_s15, 128, %s178_s5, %s165_s0  }
  0x35   : > { %p183_p2 = pnand %p463_p5, %p182_p6 }
  0x36   : > { %s188_s8 = sand.u32 (!%p183_p2), 1, %s783_s22  }
  0x37   : > { %186 = sbr.rel (%p183_p2) target bundleno = 184 (0xb8), region = 24  ;;  %s464_s17 = sshll.u32 (!%p183_p2), %s188_s8, 3 }
  0x38   : > { %s189_s12 = scalar_lea.sflag (!%p183_p2), [#allocation7], %s188_s8  ;;  %s192_s9 = scalar_lea.vmem (!%p183_p2), [#allocation6], %s464_s17 }
  0x3c   : > { %754 = dma.done.wait (%p923_p7), %s189_s12, 128  }
  0x3d   : > { %756 = vsyncadd (%p923_p7), %s189_s12, 4294967168  ;;  %s979_s29 = sand.u32 1, %s771_s19   ;;  %v222_v0 = vld [vmem:[%s192_s9] sm:$0xff]  ;;  %p465_p2 = scmp.ne.s32.totalorder %s791_s23, 0 }
  0x3e   : > { %s209_s0 = scalar_lea.vmem [#allocation9], %s979_s29  ;;  %s215_s5 = scalar_lea.vmem [#allocation10], %s979_s29 }
  0x3f   : > { %s221_s15 = scalar_lea.vmem [#allocation12], %s979_s29  ;;  %226 = sbr.rel (%p465_p2) target bundleno = 71 (0x47), region = 32 }
  0x44   : > { %vm227_vm0 = vcmask 253952   ;;  %v811_v1 = vmov -inf   ;;  %v812_v2 = vmov 0.0  }
  0x45   : > { %228 = vst.msk [vmem:[%s209_s0] sm:$0x1] %vm227_vm0, %v222_v0  ;;  %229 = vst.msk [vmem:[#allocation2] sm:$0x1] %vm227_vm0, %v811_v1 }
  0x46   : > { %230 = vst.msk [vmem:[#allocation3] sm:$0x1] %vm227_vm0, %v812_v2 }
  0x47 PF: > { %vm242_vm1 = vcmask 261120   ;;  %s988_s10 = sld [smem:[#allocation5 + %s795_s24]]  ;;  %v232_v3 = vlaneseq  ;;  %s466_s6 = sshll.u32 %s791_s23, 3  ;;  %v813_v13 = vmov 0.0   ;;  %vm251_vm3 = vcmask 253952  }
  0x48   : > { %v243_v4 = vsel %vm242_vm1, %v222_v0, -inf  ;;  %v235_v5 = vstv %s466_s6  ;;  %p468_p7 = scmp.ne.s32.totalorder %s791_s23, 1 }
  0x49   : > { %v244_v6 = vrot.slane %v243_v4, 4  ;;  %v233_v7 = vshrl.u32 %v232_v3, 7  ;;  %s814_s21 = smov (!%p468_p7), 1e-09  }
  0x4b   : > { %v245_v8 = vmax.f32 %v243_v4, %v244_v6  ;;  %v236_v9 = vadd.s32 %v235_v5, %v233_v7 }
  0x4c   : > { %v241_v17 = vld [vmem:[#allocation2] sm:$0x1] }
  0x4d   : > { %v246_v10 = vrot.slane %v245_v8, 2  ;;  %v237_v11 = vstv %s988_s10  ;;  %v253_v26 = vld [vmem:[#allocation3] sm:$0x1]  ;;  %s270_s7 = scvt.s32.f32 (!%p468_p7), %s988_s10 }
  0x4e   : > { %vm238_vm2 = vcmp.lt.s32.totalorder %v236_v9, %v237_v11 }
  0x4f   : > { %v247_v12 = vmax.f32 %v245_v8, %v246_v10  ;;  %v467_v14 = vsel %vm238_vm2, 1.0, %v813_v13  ;;  %s271_s11 = smax.f32 (!%p468_p7), %s814_s21, %s270_s7 }
  0x50   : > { %v254_v15 = vmul.f32 %v467_v14, %v222_v0 }
  0x51   : > { %v248_v16 = vrot.slane %v247_v12, 1 }
  0x52   : > { %v255_v18 = vsel %vm242_vm1, %v254_v15, 0.0 }
  0x53   : > { %v249_v19 = vmax.f32 %v247_v12, %v248_v16  ;;  %v256_v20 = vrot.slane %v255_v18, 4 }
  0x55   : > { %v250_v21 = vmax.f32 %v241_v17, %v249_v19  ;;  %v257_v22 = vadd.f32 %v256_v20, %v255_v18 }
  0x57   : > { %252 = vst.msk [vmem:[#allocation2] sm:$0x1] %vm251_vm3, %v250_v21  ;;  %v258_v23 = vrot.slane %v257_v22, 2 }
  0x59   : > { %v259_v24 = vadd.f32 %v258_v23, %v257_v22 }
  0x5b   : > { %v260_v25 = vrot.slane %v259_v24, 1 }
  0x5d   : > { %v261_v27 = vadd.f32 %v260_v25, %v259_v24  ;;  %267 = sbr.rel (%p468_p7) target bundleno = 116 (0x74), region = 36 }
  0x5f   : > { %v262_v28 = vadd.f32 %v261_v27, %v253_v26 }
  0x61   : > { %263 = vst.msk [vmem:[#allocation3] sm:$0x1] %vm251_vm3, %v262_v28 }
  0x62   : > { %v268_v29 = vld [vmem:[#allocation2] sm:$0x1]  ;;  %v272_v30 = vstv %s271_s11 }
  0x63   : > { %269 = vst.msk [vmem:[%s215_s5] sm:$0x1] %vm251_vm3, %v268_v29  ;;  %591 = vrcp.f32 %v272_v30 }
  0x68   : > { %v273_v31 = vld [vmem:[#allocation3] sm:$0x1] }
  0x70   : > { %v592_v32 = vpop.eup %591 }
  0x71   : > { %v275_v33 = vmul.f32 %v592_v32, %v273_v31 }
  0x73   : > { %276 = vst.msk [vmem:[%s221_s15] sm:$0x1] %vm251_vm3, %v275_v33 }
  0x74 PF: > { %s281_s23 = sand.u32 1, %s900_s28   ;;  %s1006_s30 = sshll.u32 %s795_s24, 4 }
  0x75   : > { %s1012_s12 = scalar_lea.hbm %s1127_s3, %s1006_s30  ;;  %s311_s9 = sshll.u32 %s215_s5, 4  ;;  %s312_s9 = int_to_ptr.vmem [resolvable:$true] %s311_s9 }
  0x76   : > { %s1020_s7 = scalar_lea.hbm %s1126_s2, %s1006_s30  ;;  %s1022_s21 = scalar_lea.sflag [#allocation11], %s281_s23 }
  0x77   : > { %s629_s28 = scalar_lea.vmem %s312_s9, 16  ;;  %s815_s24 = smov [#allocation10]  }
  0x78   : > { %p630_p4 = scmp.ne.s32.totalorder %s312_s9, %s629_s28  ;;  %s633_s11 = sshll.u32 %s815_s24, 4  ;;  %s634_s11 = int_to_ptr.vmem [resolvable:$false] %s633_s11 }
  0x79   : > { %s635_s8 = scalar_lea.vmem %s634_s11, 32  ;;  %p636_p8 = scmp.lt.s32.totalorder %s312_s9, %s634_s11 }
  0x7a   : > { %p631_p5 = pnand %p630_p4, %p932_p12  ;;  %p637_p9 = scmp.lt.s32.totalorder %s635_s8, %s629_s28 }
  0x7c   : > { %p632_p6 = pneg %p631_p5  ;;  %p638_p10 = por %p637_p9, %p636_p8 }
  0x7e   : > { %p639_p11 = pnand %p638_p10, %p632_p6 }
  0x80   : > { %642 = shalt.err (!%p639_p11)
}
  0x81   : > { %s643_s5 = scalar_lea.hbm %s1012_s12, 16  ;;  %s647_s10 = scalar_lea.hbm %s1127_s3, 32 }
  0x82   : > { %p644_p13 = scmp.ne.s32.totalorder %s1012_s12, %s643_s5  ;;  %p648_p1 = scmp.lt.s32.totalorder %s1012_s12, %s1127_s3 }
  0x83   : > { %p649_p2 = scmp.lt.s32.totalorder %s647_s10, %s643_s5 }
  0x84   : > { %p645_p0 = pnand %p644_p13, %p932_p12 }
  0x85   : > { %p650_p7 = por %p649_p2, %p648_p1 }
  0x86   : > { %p646_p3 = pneg %p645_p0 }
  0x88   : > { %p651_p4 = pnand %p650_p7, %p646_p3 }
  0x8a   : > { %654 = shalt.err (!%p651_p4)
}
  0x8b   : > { %477 = dma.vmem_to_hbm [thread:$0]  (%p932_p12), %s312_s9, 16, %s1012_s12, %s1022_s21  }
  0x8c   : > { %s298_s28 = sshll.u32 %s209_s0, 4  ;;  %s1047_s23 = scalar_lea.hbm %s1128_s4, %s1006_s30  ;;  %s299_s28 = int_to_ptr.vmem [resolvable:$true] %s298_s28 }
  0x8d   : > { %s324_s5 = sshll.u32 %s221_s15, 4  ;;  %s278_s17 = scalar_lea.sflag [#allocation8], %s979_s29  ;;  %s325_s5 = int_to_ptr.vmem [resolvable:$true] %s324_s5 }
  0x8e   : > { %s655_s10 = scalar_lea.vmem %s299_s28, 16  ;;  %s816_s6 = smov [#allocation9]  }
  0x8f   : > { %p656_p5 = scmp.ne.s32.totalorder %s299_s28, %s655_s10  ;;  %s659_s24 = sshll.u32 %s816_s6, 4  ;;  %s660_s24 = int_to_ptr.vmem [resolvable:$false] %s659_s24 }
  0x90   : > { %s661_s12 = scalar_lea.vmem %s660_s24, 32  ;;  %p662_p9 = scmp.lt.s32.totalorder %s299_s28, %s660_s24 }
  0x91   : > { %p657_p6 = pnand %p656_p5, %p932_p12  ;;  %p663_p10 = scmp.lt.s32.totalorder %s661_s12, %s655_s10 }
  0x93   : > { %p658_p8 = pneg %p657_p6  ;;  %p664_p11 = por %p663_p10, %p662_p9 }
  0x95   : > { %p665_p13 = pnand %p664_p11, %p658_p8 }
  0x97   : > { %668 = shalt.err (!%p665_p13)
}
  0x98   : > { %s669_s0 = scalar_lea.hbm %s1020_s7, 16  ;;  %s673_s30 = scalar_lea.hbm %s1126_s2, 32 }
  0x99   : > { %p670_p0 = scmp.ne.s32.totalorder %s1020_s7, %s669_s0  ;;  %p674_p2 = scmp.lt.s32.totalorder %s1020_s7, %s1126_s2 }
  0x9a   : > { %p675_p7 = scmp.lt.s32.totalorder %s673_s30, %s669_s0 }
  0x9b   : > { %p671_p3 = pnand %p670_p0, %p932_p12 }
  0x9c   : > { %p676_p4 = por %p675_p7, %p674_p2 }
  0x9d   : > { %p672_p1 = pneg %p671_p3 }
  0x9f   : > { %p677_p5 = pnand %p676_p4, %p672_p1 }
  0xa1   : > { %680 = shalt.err (!%p677_p5)
}
  0xa2   : > { %476 = dma.vmem_to_hbm [thread:$0]  (%p932_p12), %s299_s28, 16, %s1020_s7, %s278_s17  }
  0xa3   : > { %s681_s8 = scalar_lea.vmem %s325_s5, 16  ;;  %s817_s10 = smov [#allocation12]  }
  0xa4   : > { %p682_p6 = scmp.ne.s32.totalorder %s325_s5, %s681_s8  ;;  %s685_s6 = sshll.u32 %s817_s10, 4  ;;  %s686_s6 = int_to_ptr.vmem [resolvable:$false] %s685_s6 }
  0xa5   : > { %s687_s24 = scalar_lea.vmem %s686_s6, 32  ;;  %p688_p10 = scmp.lt.s32.totalorder %s325_s5, %s686_s6 }
  0xa6   : > { %p683_p8 = pnand %p682_p6, %p932_p12  ;;  %p689_p11 = scmp.lt.s32.totalorder %s687_s24, %s681_s8 }
  0xa8   : > { %p684_p9 = pneg %p683_p8  ;;  %p690_p13 = por %p689_p11, %p688_p10 }
  0xaa   : > { %p691_p0 = pnand %p690_p13, %p684_p9 }
  0xac   : > { %694 = shalt.err (!%p691_p0)
}
  0xad   : > { %s695_s7 = scalar_lea.hbm %s1047_s23, 16  ;;  %s699_s12 = scalar_lea.hbm %s1128_s4, 32 }
  0xae   : > { %p696_p3 = scmp.ne.s32.totalorder %s1047_s23, %s695_s7  ;;  %p700_p7 = scmp.lt.s32.totalorder %s1047_s23, %s1128_s4 }
  0xaf   : > { %p701_p4 = scmp.lt.s32.totalorder %s699_s12, %s695_s7 }
  0xb0   : > { %p697_p1 = pnand %p696_p3, %p932_p12 }
  0xb1   : > { %p702_p5 = por %p701_p4, %p700_p7 }
  0xb2   : > { %p698_p2 = pneg %p697_p1 }
  0xb4   : > { %p703_p6 = pnand %p702_p5, %p698_p2 }
  0xb6   : > { %706 = shalt.err (!%p703_p6)
}
  0xb7   : > { %478 = dma.vmem_to_hbm [thread:$0]  (%p932_p12), %s325_s5, 16, %s1047_s23, %s1022_s21  }
  0xb8 PF: > { %p497_p8 = scmp.ge.s32.totalorder %s807_s27, 2  ;;  %s336_s15 = sand.u32 1, %s767_s18  }
  0xb9   : > { %p1142_p9 = scmp.ne.s32.totalorder %s1140_s16, 0  ;;  %s337_s30 = scalar_lea.sflag [#allocation8], %s336_s15 }
  0xbb   : > { %p487_p10 = pnand %p497_p8, %p1142_p9 }
  0xbd   : > { %p488_p11 = pneg %p487_p10 }
  0xbf   : > { %758 = dma.done.wait (%p488_p11), %s337_s30, 16  }
  0xc0   : > { %760 = vsyncadd (%p488_p11), %s337_s30, 4294967280  ;;  %s1143_s9 = sadd.s32 4294967294, %s807_s27  }
  0xc1   : > { %s344_s11 = sand.u32 1, %s1143_s9  }
  0xc2   : > { %s345_s8 = scalar_lea.sflag [#allocation11], %s344_s11 }
  0xc3   : > { %762 = dma.done.wait (%p488_p11), %s345_s8, 32  }
  0xc4   : > { %764 = vsyncadd (%p488_p11), %s345_s8, 4294967264  ;;  %s28_s27 = sadd.s32 1, %s807_s27   ;;  %s1144_s13 = sld [smem:[#allocation17_spill]] }
  0xc5   : > { %p25_p12 = scmp.ge.s32.totalorder %s28_s27, 6   ;;  %s1145_s0 = sld [smem:[#allocation20_spill]] }
  0xc6   : > { %s1146_s16 = sld [smem:[#allocation18_spill]]  ;;  %s1148_s18 = smov %s771_s19 }
  0xc7   : > { %s1147_s5 = sld [smem:[#allocation19_spill]]  ;;  %s1149_s19 = smov %s775_s20 }
  0xc8   : > { %s1150_s20 = smov %s937_s14  ;;  %s1151_s21 = smov %s783_s22 }
  0xc9   : > { %s1153_s23 = smov %s799_s25  ;;  %s1154_s24 = smov %s803_s26 }
  0xca   : > { %s1152_s22 = smov %s1144_s13  ;;  %27 = sbr.rel (!%p25_p12) target bundleno = 16 (0x10), region = 109 }
  0xcc   : > { %s1155_s25 = smov %s1146_s16 }
  0xcd   : > { %s1156_s26 = smov %s1147_s5 }
  0xcf   :  { %357 = vsyncpa [#allocation7], 1 }
  0xd0   :  { %359 = vsyncpa [#allocation7 + $0x1], 1 }
  0xd1   :  { %360 = vsyncpa [#allocation8], 1 }
  0xd2   :  { %362 = vsyncpa [#allocation8 + $0x1], 1 }
  0xd3   :  { %363 = vsyncpa [#allocation11], 1 }
  0xd4   :  { %365 = vsyncpa [#allocation11 + $0x1], 1 }

</bundles_post_ra>
